<compile_context>
chip_gen: v7x
topology: tpu7x:2x2x1
jax: 0.10.0
libtpu: 0.0.40
codegen_flags: <defaults>
</compile_context>

<pallas_src>
import jax
import jax.numpy as jnp
from jax.experimental import pallas as pl
from jax.experimental.pallas import tpu as pltpu


def _scan_attention_kernel(x_ref, h_ref, w_ref, f_ref, out_ref):
    C = w_ref.shape[0]
    R = (f_ref.shape[1] - 3) // 3
    S = x_ref.shape[-1]
    b_blk = x_ref.shape[0]

    W = w_ref[...]                          # (C, 3C) bf16  [w_xa | w_ha | w_y]
    F = f_ref[...]                          # (C, 3R+3) f32 small operands
    w_xa = W[:, :C]                         # (C, C)
    w_ha = W[:, C: 2 * C]                   # (C, C)
    w_y = W[:, 2 * C:]                      # (C, C)
    w1t = F[:, :R]                          # (C, R) == w1.T
    w2 = F[:, R: 2 * R]                     # (C, R)
    b1_row = F[0:1, 2 * R: 3 * R]           # (1, R)
    b_comb = F[:, 3 * R: 3 * R + 1]         # (C, 1) == b_xa + b_ha + b_A
    b_y = F[:, 3 * R + 1: 3 * R + 2]        # (C, 1)
    b2 = F[:, 3 * R + 2: 3 * R + 3]         # (C, 1)
    inv_s = 1.0 / S

    # Statically-unrolled loop: b_blk independent per-batch dependency chains
    # that the scheduler interleaves (hides MXU/EUP/XLU fill latency).
    for b in range(b_blk):
        x_b = x_ref[b]                      # (C, S) f32
        h_b = h_ref[b]                      # (C, S) f32

        # Fused 1x1-conv projections: bf16 MXU matmuls, f32 accumulation,
        # biases pre-summed into b_comb.
        proj = (jnp.dot(w_xa, x_b.astype(jnp.bfloat16),
                        preferred_element_type=jnp.float32)
                + jnp.dot(w_ha, h_b.astype(jnp.bfloat16),
                          preferred_element_type=jnp.float32)
                + b_comb)
        combined = jnp.tanh(proj)                                   # (C, S) f32
        y = jnp.dot(w_y, combined.astype(jnp.bfloat16),
                    preferred_element_type=jnp.float32) + b_y       # (C, S) f32

        # Spatial softmax; divide goes to the EUP via approx reciprocal.
        m = jnp.max(y, axis=-1, keepdims=True)
        e = jnp.exp(y - m)
        denom = jnp.sum(e, axis=-1, keepdims=True)
        alpha = e * pl.reciprocal(denom, approx=True)               # (C, S)

        x_hat = alpha * x_b                                         # f32 x path

        # adaptive_avg_pool2d((1,1)) == mean over the lane (spatial) axis.
        pooled = (jnp.sum(x_hat, axis=-1, keepdims=True)
                  + jnp.sum(h_b, axis=-1, keepdims=True)) * inv_s   # (C, 1)

        # Squeeze-excite on VPU/XLU: multiply + reduce, no 1-lane MXU matmuls.
        inter = jnp.maximum(
            jnp.sum(w1t * pooled, axis=0, keepdims=True) + b1_row, 0.0)  # (1,R)
        ca = jax.nn.sigmoid(
            jnp.sum(w2 * inter, axis=-1, keepdims=True) + b2)           # (C,1)

        out_ref[b] = (x_hat * ca).astype(out_ref.dtype)


def pack_params(params):
    """Pack the 11 module parameters into 2 arrays (1 bf16 + 1 f32)."""
    (w_xa, b_xa, w_ha, b_ha, w_y, b_y, b_A, w1, b1, w2, b2) = params
    C = w_xa.shape[0]
    R = w1.shape[0]
    w_pack = jnp.concatenate([w_xa, w_ha, w_y], axis=1).astype(jnp.bfloat16)
    b_comb = b_xa + b_ha + b_A
    b1_block = jnp.broadcast_to(b1.reshape(1, R), (C, R))
    f_pack = jnp.concatenate(
        [w1.T, w2, b1_block, b_comb, b_y, b2], axis=1).astype(jnp.float32)
    return w_pack, f_pack   # (C, 3C) bf16, (C, 3R+3) f32


def _choose_batch_block(B, max_chains=8):
    """Largest divisor of B (<= max_chains) that keeps >= 2 grid steps.

    >=2 steps keeps both v7x TensorCores busy; multiple batch elements per
    step give independent chains for latency hiding on all generations.
    """
    if B <= 1:
        return 1
    best = 1
    for d in range(1, min(B, max_chains) + 1):
        if B % d == 0 and B // d >= 2:
            best = d
    return best


def scan_attention(x, h, params, out_dtype=jnp.float32):
    """x, h: (B, C, H, W) float32.  Returns Z_t of the same shape.

    out_dtype=jnp.bfloat16 halves writeback DMA (useful on v5e) if the
    consumer accepts bf16; default f32 matches the PyTorch module.
    """
    B, C, H, W = x.shape
    S = H * W
    w_pack, f_pack = pack_params(params)
    R = (f_pack.shape[1] - 3) // 3

    # Free reshapes only -- no extra HBM round trip for repacking/casting.
    xr = x.reshape(B, C, S)
    hr = h.reshape(B, C, S)

    b_blk = _choose_batch_block(B)
    n_steps = B // b_blk

    flops = B * (6 * C * C * S + 6 * C * S + 4 * C * R)
    transcendentals = B * (2 * C * S + 2 * C)
    out_bytes = B * C * S * jnp.dtype(out_dtype).itemsize
    bytes_accessed = (xr.size * 4 + hr.size * 4 + out_bytes
                      + w_pack.size * 2 + f_pack.size * 4)

    out = pl.pallas_call(
        _scan_attention_kernel,
        out_shape=jax.ShapeDtypeStruct((B, C, S), out_dtype),
        grid=(n_steps,),
        in_specs=[
            pl.BlockSpec((b_blk, C, S), lambda i: (i, 0, 0)),
            pl.BlockSpec((b_blk, C, S), lambda i: (i, 0, 0)),
            # Grid-invariant weight packs: whole-array resident in VMEM,
            # single-buffered (no wasted double buffering).
            pl.BlockSpec(memory_space=pltpu.MemorySpace.VMEM),
            pl.BlockSpec(memory_space=pltpu.MemorySpace.VMEM),
        ],
        out_specs=pl.BlockSpec((b_blk, C, S), lambda i: (i, 0, 0)),
        compiler_params=pltpu.CompilerParams(
            dimension_semantics=("parallel",),
            vmem_limit_bytes=32 * 1024 * 1024),
        cost_estimate=pl.CostEstimate(
            flops=flops,
            transcendentals=transcendentals,
            bytes_accessed=bytes_accessed),
    )(xr, hr, w_pack, f_pack)

    return out.reshape(B, C, H, W).astype(out_dtype)


def reference(x, h, params):
    """Plain-JAX f32 reference mirroring the PyTorch forward."""
    (w_xa, b_xa, w_ha, b_ha, w_y, b_y, b_A, w1, b1, w2, b2) = params
    B, C, H, W = x.shape
    S = H * W
    xf = x.reshape(B, C, S)
    hf = h.reshape(B, C, S)
    hi = jax.lax.Precision.HIGHEST
    xp = jnp.einsum('oc,bcs->bos', w_xa, xf, precision=hi) + b_xa[None]
    hp = jnp.einsum('oc,bcs->bos', w_ha, hf, precision=hi) + b_ha[None]
    comb = jnp.tanh(xp + hp + b_A[None])
    y = jnp.einsum('oc,bcs->bos', w_y, comb, precision=hi) + b_y[None]
    alpha = jax.nn.softmax(y, axis=-1)
    x_hat = alpha * xf
    pooled = x_hat.mean(-1, keepdims=True) + hf.mean(-1, keepdims=True)
    inter = jax.nn.relu(jnp.einsum('rc,bcs->brs', w1, pooled, precision=hi) + b1[None])
    ca = jax.nn.sigmoid(jnp.einsum('cr,brs->bcs', w2, inter, precision=hi) + b2[None])
    return (x_hat * ca).reshape(B, C, H, W)


def init_params(key, C, reduction_ratio=8):
    R = C // reduction_ratio
    ks = jax.random.split(key, 10)
    scale = 0.1
    w_xa = scale * jax.random.normal(ks[0], (C, C), jnp.float32)
    b_xa = scale * jax.random.normal(ks[1], (C, 1), jnp.float32)
    w_ha = scale * jax.random.normal(ks[2], (C, C), jnp.float32)
    b_ha = scale * jax.random.normal(ks[3], (C, 1), jnp.float32)
    w_y = scale * jax.random.normal(ks[4], (C, C), jnp.float32)
    b_y = scale * jax.random.normal(ks[5], (C, 1), jnp.float32)
    b_A = jnp.zeros((C, 1), jnp.float32)      # torch.zeros(C,1,1) -> (C,1)
    w1 = scale * jax.random.normal(ks[6], (R, C), jnp.float32)
    b1 = scale * jax.random.normal(ks[7], (R, 1), jnp.float32)
    w2 = scale * jax.random.normal(ks[8], (C, R), jnp.float32)
    b2 = scale * jax.random.normal(ks[9], (C, 1), jnp.float32)
    return (w_xa, b_xa, w_ha, b_ha, w_y, b_y, b_A, w1, b1, w2, b2)


if __name__ == "__main__":
    B, C, H, W = 2, 16, 16, 16          # reduction_ratio=8 -> reduced_channels=2
    key = jax.random.PRNGKey(0)
    kx, kh, kp = jax.random.split(key, 3)
    X_t = jax.random.normal(kx, (B, C, H, W), jnp.float32)
    H_prev = jax.random.normal(kh, (B, C, H, W), jnp.float32)
    params = init_params(kp, C, reduction_ratio=8)

    z = jax.block_until_ready(scan_attention(X_t, H_prev, params))
    z_ref = jax.block_until_ready(reference(X_t, H_prev, params))

    assert z.shape == (B, C, H, W)
    max_err = jnp.max(jnp.abs(z - z_ref))
    assert jnp.allclose(z, z_ref, rtol=1e-2, atol=1e-2), \
        f"max abs err = {max_err}"

    print("KERNEL_OK")
</pallas_src>

<mosaic_0001>
module attributes {stable_mosaic.version = 11 : i64} {
  func.func @_scan_attention_kernel(%arg0: i32, %arg1: memref<1x16x256xf32, #tpu.memory_space<vmem>>, %arg2: memref<1x16x256xf32, #tpu.memory_space<vmem>>, %arg3: memref<16x48xbf16, #tpu.memory_space<vmem>>, %arg4: memref<16x9xf32, #tpu.memory_space<vmem>>, %arg5: memref<1x16x256xf32, #tpu.memory_space<vmem>>) attributes {dimension_semantics = [#tpu.dimension_semantics<parallel>], iteration_bounds = array<i64: 2>, scalar_prefetch = 0 : i64, scratch_operands = 0 : i64, tpu.core_type = #tpu.core_type<tc>, window_params = [{transform_indices = @transform_0, window_bounds = array<i64: 1, 16, 256>}, {transform_indices = @transform_1, window_bounds = array<i64: 1, 16, 256>}, {pipeline_mode = #tpu.pipeline_mode<synchronous>, transform_indices = @transform_2, window_bounds = array<i64: 16, 48>}, {pipeline_mode = #tpu.pipeline_mode<synchronous>, transform_indices = @transform_3, window_bounds = array<i64: 16, 9>}, {transform_indices = @transform_4, window_bounds = array<i64: 1, 16, 256>}]} {
    %c0 = arith.constant 0 : index
    %c0_0 = arith.constant 0 : index
    %0 = vector.load %arg3[%c0, %c0_0] : memref<16x48xbf16, #tpu.memory_space<vmem>>, vector<16x48xbf16>
    %c0_1 = arith.constant 0 : index
    %c0_2 = arith.constant 0 : index
    %1 = vector.load %arg4[%c0_1, %c0_2] : memref<16x9xf32, #tpu.memory_space<vmem>>, vector<16x9xf32>
    %2 = vector.extract_strided_slice %0 {offsets = [0, 0], sizes = [16, 16], strides = [1, 1]} : vector<16x48xbf16> to vector<16x16xbf16>
    %3 = vector.extract_strided_slice %0 {offsets = [0, 16], sizes = [16, 16], strides = [1, 1]} : vector<16x48xbf16> to vector<16x16xbf16>
    %4 = vector.extract_strided_slice %0 {offsets = [0, 32], sizes = [16, 16], strides = [1, 1]} : vector<16x48xbf16> to vector<16x16xbf16>
    %5 = vector.extract_strided_slice %1 {offsets = [0, 0], sizes = [16, 2], strides = [1, 1]} : vector<16x9xf32> to vector<16x2xf32>
    %6 = vector.extract_strided_slice %1 {offsets = [0, 2], sizes = [16, 2], strides = [1, 1]} : vector<16x9xf32> to vector<16x2xf32>
    %7 = vector.extract_strided_slice %1 {offsets = [0, 4], sizes = [1, 2], strides = [1, 1]} : vector<16x9xf32> to vector<1x2xf32>
    %8 = vector.extract_strided_slice %1 {offsets = [0, 6], sizes = [16, 1], strides = [1, 1]} : vector<16x9xf32> to vector<16x1xf32>
    %9 = vector.extract_strided_slice %1 {offsets = [0, 7], sizes = [16, 1], strides = [1, 1]} : vector<16x9xf32> to vector<16x1xf32>
    %10 = vector.extract_strided_slice %1 {offsets = [0, 8], sizes = [16, 1], strides = [1, 1]} : vector<16x9xf32> to vector<16x1xf32>
    %c0_3 = arith.constant 0 : index
    %c0_4 = arith.constant 0 : index
    %c0_5 = arith.constant 0 : index
    %11 = vector.load %arg1[%c0_3, %c0_4, %c0_5] : memref<1x16x256xf32, #tpu.memory_space<vmem>>, vector<1x16x256xf32>
    %12 = vector.shape_cast %11 : vector<1x16x256xf32> to vector<16x256xf32>
    %c0_6 = arith.constant 0 : index
    %c0_7 = arith.constant 0 : index
    %c0_8 = arith.constant 0 : index
    %13 = vector.load %arg2[%c0_6, %c0_7, %c0_8] : memref<1x16x256xf32, #tpu.memory_space<vmem>>, vector<1x16x256xf32>
    %14 = vector.shape_cast %13 : vector<1x16x256xf32> to vector<16x256xf32>
    %15 = arith.truncf %12 : vector<16x256xf32> to vector<16x256xbf16>
    %cst = arith.constant dense<0.000000e+00> : vector<16x256xf32>
    %16 = tpu.matmul %2, %15, %cst {dimension_numbers = #tpu.dot_dimension_numbers<[1], [0], [0], [1], [0, 0, 1, 1], [], []>} : vector<16x16xbf16>, vector<16x256xbf16>, vector<16x256xf32> -> vector<16x256xf32>
    %17 = arith.truncf %14 : vector<16x256xf32> to vector<16x256xbf16>
    %cst_9 = arith.constant dense<0.000000e+00> : vector<16x256xf32>
    %18 = tpu.matmul %3, %17, %cst_9 {dimension_numbers = #tpu.dot_dimension_numbers<[1], [0], [0], [1], [0, 0, 1, 1], [], []>} : vector<16x16xbf16>, vector<16x256xbf16>, vector<16x256xf32> -> vector<16x256xf32>
    %19 = arith.addf %16, %18 : vector<16x256xf32>
    %20 = vector.broadcast %8 : vector<16x1xf32> to vector<16x256xf32>
    %21 = arith.addf %19, %20 : vector<16x256xf32>
    %22 = math.tanh %21 : vector<16x256xf32>
    %23 = arith.truncf %22 : vector<16x256xf32> to vector<16x256xbf16>
    %cst_10 = arith.constant dense<0.000000e+00> : vector<16x256xf32>
    %24 = tpu.matmul %4, %23, %cst_10 {dimension_numbers = #tpu.dot_dimension_numbers<[1], [0], [0], [1], [0, 0, 1, 1], [], []>} : vector<16x16xbf16>, vector<16x256xbf16>, vector<16x256xf32> -> vector<16x256xf32>
    %25 = vector.broadcast %9 : vector<16x1xf32> to vector<16x256xf32>
    %26 = arith.addf %24, %25 : vector<16x256xf32>
    %cst_11 = arith.constant dense<0xFF800000> : vector<16xf32>
    %27 = vector.multi_reduction <maximumf>, %26, %cst_11 [1] : vector<16x256xf32> to vector<16xf32>
    %28 = vector.shape_cast %27 : vector<16xf32> to vector<16x1xf32>
    %29 = vector.broadcast %28 : vector<16x1xf32> to vector<16x256xf32>
    %30 = arith.subf %26, %29 : vector<16x256xf32>
    %31 = math.exp %30 : vector<16x256xf32>
    %cst_12 = arith.constant dense<0.000000e+00> : vector<16xf32>
    %32 = vector.multi_reduction <add>, %31, %cst_12 [1] : vector<16x256xf32> to vector<16xf32>
    %33 = vector.shape_cast %32 : vector<16xf32> to vector<16x1xf32>
    %34 = tpu.reciprocal %33 {approx = true} : vector<16x1xf32> -> vector<16x1xf32>
    %35 = vector.broadcast %34 : vector<16x1xf32> to vector<16x256xf32>
    %36 = arith.mulf %31, %35 : vector<16x256xf32>
    %37 = arith.mulf %36, %12 : vector<16x256xf32>
    %cst_13 = arith.constant dense<0.000000e+00> : vector<16xf32>
    %38 = vector.multi_reduction <add>, %37, %cst_13 [1] : vector<16x256xf32> to vector<16xf32>
    %39 = vector.shape_cast %38 : vector<16xf32> to vector<16x1xf32>
    %cst_14 = arith.constant dense<0.000000e+00> : vector<16xf32>
    %40 = vector.multi_reduction <add>, %14, %cst_14 [1] : vector<16x256xf32> to vector<16xf32>
    %41 = vector.shape_cast %40 : vector<16xf32> to vector<16x1xf32>
    %42 = arith.addf %39, %41 : vector<16x1xf32>
    %cst_15 = arith.constant 3.906250e-03 : f32
    %43 = vector.broadcast %cst_15 : f32 to vector<16x1xf32>
    %44 = arith.mulf %42, %43 : vector<16x1xf32>
    %45 = vector.broadcast %44 : vector<16x1xf32> to vector<16x2xf32>
    %46 = arith.mulf %5, %45 : vector<16x2xf32>
    %cst_16 = arith.constant dense<0.000000e+00> : vector<2xf32>
    %47 = vector.multi_reduction <add>, %46, %cst_16 [0] : vector<16x2xf32> to vector<2xf32>
    %48 = vector.shape_cast %47 : vector<2xf32> to vector<1x2xf32>
    %49 = arith.addf %48, %7 : vector<1x2xf32>
    %cst_17 = arith.constant 0.000000e+00 : f32
    %50 = vector.broadcast %cst_17 : f32 to vector<1x2xf32>
    %51 = arith.maximumf %49, %50 : vector<1x2xf32>
    %52 = vector.broadcast %51 : vector<1x2xf32> to vector<16x2xf32>
    %53 = arith.mulf %6, %52 : vector<16x2xf32>
    %cst_18 = arith.constant dense<0.000000e+00> : vector<16xf32>
    %54 = vector.multi_reduction <add>, %53, %cst_18 [1] : vector<16x2xf32> to vector<16xf32>
    %55 = vector.shape_cast %54 : vector<16xf32> to vector<16x1xf32>
    %56 = arith.addf %55, %10 : vector<16x1xf32>
    %57 = arith.negf %56 : vector<16x1xf32>
    %58 = math.exp %57 : vector<16x1xf32>
    %cst_19 = arith.constant 1.000000e+00 : f32
    %59 = vector.broadcast %cst_19 : f32 to vector<16x1xf32>
    %60 = arith.addf %59, %58 : vector<16x1xf32>
    %61 = arith.divf %59, %60 : vector<16x1xf32>
    %62 = vector.broadcast %61 : vector<16x1xf32> to vector<16x256xf32>
    %63 = arith.mulf %37, %62 : vector<16x256xf32>
    %c0_20 = arith.constant 0 : index
    %c0_21 = arith.constant 0 : index
    %c0_22 = arith.constant 0 : index
    %64 = vector.load %arg5[%c0_20, %c0_21, %c0_22] : memref<1x16x256xf32, #tpu.memory_space<vmem>>, vector<1x16x256xf32>
    %65 = vector.shape_cast %64 : vector<1x16x256xf32> to vector<16x256xf32>
    %66 = vector.shape_cast %63 : vector<16x256xf32> to vector<1x16x256xf32>
    tpu.vector_store %arg5[%c0_20, %c0_21, %c0_22], %66 {strides = array<i32>} : memref<1x16x256xf32, #tpu.memory_space<vmem>>, vector<1x16x256xf32>,
    return
  }
  func.func @transform_0(%arg0: i32) -> (i32, i32, i32) {
    %c0_i32 = arith.constant 0 : i32
    %c0_i32_0 = arith.constant 0 : i32
    %c0_i32_1 = arith.constant 0 : i32
    return %arg0, %c0_i32, %c0_i32_0 : i32, i32, i32
  }
  func.func @transform_1(%arg0: i32) -> (i32, i32, i32) {
    %c0_i32 = arith.constant 0 : i32
    %c0_i32_0 = arith.constant 0 : i32
    %c0_i32_1 = arith.constant 0 : i32
    return %arg0, %c0_i32, %c0_i32_0 : i32, i32, i32
  }
  func.func @transform_2(%arg0: i32) -> (i32, i32) {
    %c0_i32 = arith.constant 0 : i32
    %c0_i32_0 = arith.constant 0 : i32
    %c0_i32_1 = arith.constant 0 : i32
    return %c0_i32, %c0_i32_0 : i32, i32
  }
  func.func @transform_3(%arg0: i32) -> (i32, i32) {
    %c0_i32 = arith.constant 0 : i32
    %c0_i32_0 = arith.constant 0 : i32
    %c0_i32_1 = arith.constant 0 : i32
    return %c0_i32, %c0_i32_0 : i32, i32
  }
  func.func @transform_4(%arg0: i32) -> (i32, i32, i32) {
    %c0_i32 = arith.constant 0 : i32
    %c0_i32_0 = arith.constant 0 : i32
    %c0_i32_1 = arith.constant 0 : i32
    return %arg0, %c0_i32, %c0_i32_0 : i32, i32, i32
  }
}

</mosaic_0001>

<bundles_post_ra>
// kernel: tpu_custom_call.1
= control target key start
LH: loop header
LB: loop body
LE: loop exit
PB: predicated region body
PF: predicated region fallthrough
CT: control target
= control target key end

     0   :  { %s1504_s0 = inlined_call_operand.hbm [shape: f32[2,16,256], index: 0, kind: input, shape index: {}]   ;;  %s1505_s1 = inlined_call_operand.hbm [shape: f32[2,16,256], index: 1, kind: input, shape index: {}]   ;;  %s1506_s2 = inlined_call_operand.hbm [shape: bf16[16,48], index: 2, kind: input, shape index: {}]   ;;  %s1507_s3 = inlined_call_operand.hbm [shape: f32[16,9], index: 3, kind: input, shape index: {}]   ;;  %s1508_s4 = inlined_call_operand.hbm [shape: f32[2,16,256], index: 4, kind: output, shape index: {}]  }
   0x1   :  { %1512 = sst [smem:[#allocation16_spill]] %s1504_s0 }
   0x2   :  { %9 = vsyncpa [#allocation3], 0 }
   0x3   :  { %11 = vsyncpa [#allocation3 + $0x1], 0 }
   0x4   :  { %12 = vsyncpa [#allocation6], 0 }
   0x5   :  { %14 = vsyncpa [#allocation6 + $0x1], 0 }
   0x6   :  { %15 = vsyncpa [#allocation9], 0 }
   0x7   :  { %16 = vsyncpa [#allocation4], 0 }
   0x8   :  { %18 = vsyncpa [#allocation4 + $0x1], 0  ;;  %s1132_s15 = smov 0   ;;  %s1134_s16 = smov 0  }
   0x9   :  { %s1136_s17 = smov 0   ;;  %s1138_s18 = smov 0  }
   0xa LB: > { %s1153_s19 = sadd.s32 4294967295, %s1083_s18   ;;  %s730_s20 = sadd.s32 4294967294, %s1083_s18   ;;  %s1083_s18 = sphi %s1138_s18, %s1532_s18   ;;  %s1079_s17 = sphi %s1136_s17, %s1531_s17   ;;  %s1075_s16 = sphi %s1134_s16, %s1530_s16   ;;  %s1071_s15 = sphi %s1132_s15, %s1529_s15  }
   0xb   : > { %p44_p0 = scmp.ne.s32.totalorder %s1075_s16, %s1071_s15  ;;  %p1509_p1 = scmp.eq.s32.totalorder %s1153_s19, 0 }
   0xc   : > { %p142_p3 = scmp.eq.s32.totalorder %s730_s20, 1  ;;  %p731_p5 = scmp.ge.s32.totalorder %s1083_s18, 1 }
   0xd   : > { %p1162_p4 = por %p1509_p1, %p44_p0  ;;  %p149_p7 = scmp.lt.s32.totalorder %s1083_s18, 3 }
   0xe   : > { %p1167_p6 = por %p142_p3, %p44_p0  ;;  %s1085_s24 = smov [#allocation7]  }
   0xf   : > { %s1513_s21 = scalar_select %p1162_p4, 1, 0 }
  0x10   : > { %s1514_s22 = scalar_select %p1167_p6, 1, 0 }
  0x11   : > { %p1172_p8 = pnand %p731_p5, %p149_p7  ;;  %s161_s25 = sshll.u32 %s1085_s24, 4  ;;  %s1176_s25 = int_to_ptr.vmem [resolvable:$true] %s161_s25 }
  0x12   : > { %s1086_s27 = smov [#allocation8]   ;;  %s889_s5 = scalar_lea.hbm %s1506_s2, 128 }
  0x13   : > { %p779_p9 = pneg %p1172_p8  ;;  %s174_s28 = sshll.u32 %s1086_s27, 4  ;;  %s1187_s28 = int_to_ptr.vmem [resolvable:$true] %s174_s28 }
  0x14   : > { %p890_p12 = scmp.ne.s32.totalorder %s1506_s2, %s889_s5  ;;  %p896_p5 = scmp.lt.u32.totalorder %s889_s5, %s1506_s2 }
  0x15   : > { %p1183_p11 = pnand %p779_p9, %p1509_p1 }
  0x17   : > { %p891_p13 = pneg %p1183_p11 }
  0x19   : > { %p892_p0 = pnand %p891_p13, %p890_p12 }
  0x1b   : > { %p893_p3 = pneg %p892_p0 }
  0x1d   : > { %p898_p7 = pnand %p896_p5, %p893_p3 }
  0x1f   : > { %901 = shalt.err (!%p898_p7)
}
  0x20   : > { %s902_s10 = scalar_lea.vmem %s1176_s25, 128  ;;  %p910_p2 = scmp.lt.s32.totalorder %s1176_s25, %s1176_s25 }
  0x21   : > { %p903_p9 = scmp.ne.s32.totalorder %s1176_s25, %s902_s10  ;;  %p911_p12 = scmp.lt.s32.totalorder %s902_s10, %s902_s10 }
  0x23   : > { %p905_p10 = pnand %p903_p9, %p891_p13  ;;  %p912_p0 = por %p911_p12, %p910_p2 }
  0x25   : > { %p906_p1 = pneg %p905_p10 }
  0x27   : > { %p913_p6 = pnand %p912_p0, %p906_p1 }
  0x29   : > { %916 = shalt.err (!%p913_p6)
}
  0x2a   : > { %s1087_s11 = smov 64   ;;  %s1088_s12 = smov 4  }
  0x2b   : > { %782 = dma.hbm_to_vmem [thread:$0]  (!%p1183_p11), %s1506_s2, 128, %s1176_s25, [#allocation6], %s1087_s11, %s1087_s11, %s1088_s12  }
  0x2c   : > { %s917_s27 = scalar_lea.hbm %s1507_s3, 256 }
  0x2d   : > { %p918_p2 = scmp.ne.s32.totalorder %s1507_s3, %s917_s27  ;;  %p924_p10 = scmp.lt.u32.totalorder %s917_s27, %s1507_s3 }
  0x2f   : > { %p920_p1 = pnand %p918_p2, %p891_p13 }
  0x31   : > { %p921_p6 = pneg %p920_p1 }
  0x33   : > { %p926_p3 = pnand %p924_p10, %p921_p6 }
  0x35   : > { %929 = shalt.err (!%p926_p3)
}
  0x36   : > { %s930_s25 = scalar_lea.vmem %s1187_s28, 256  ;;  %p938_p12 = scmp.lt.s32.totalorder %s1187_s28, %s1187_s28 }
  0x37   : > { %p931_p5 = scmp.ne.s32.totalorder %s1187_s28, %s930_s25  ;;  %p939_p0 = scmp.lt.s32.totalorder %s930_s25, %s930_s25 }
  0x39   : > { %p933_p7 = pnand %p931_p5, %p891_p13  ;;  %p940_p2 = por %p939_p0, %p938_p12 }
  0x3b   : > { %p934_p9 = pneg %p933_p7 }
  0x3d   : > { %p941_p1 = pnand %p940_p2, %p934_p9 }
  0x3f   : > { %944 = shalt.err (!%p941_p1)
}
  0x40   : > { %s1089_s7 = smov 128   ;;  %s1090_s8 = smov 8  }
  0x41   : > { %785 = dma.hbm_to_vmem [thread:$0]  (!%p1183_p11), %s1507_s3, 256, %s1187_s28, [#allocation9], %s1089_s7, %s1089_s7, %s1090_s8  }
  0x42   : > { %s1242_s11 = sadd.s32 1, %s1083_s18   ;;  %s31_s13 = sadd.s32 1, %s1079_s17 }
  0x43   : > { %s28_s12 = ssub.s32 %s1083_s18, %s1242_s11  ;;  %p38_p6 = scmp.ne.s32.totalorder %s1079_s17, %s1075_s16 }
  0x44   : > { %p29_p13 = scmp.eq.s32.totalorder %s28_s12, 0  ;;  %p39_p10 = scmp.eq.s32.totalorder %s1083_s18, 0 }
  0x45   : > { %p1517_p5 = scmp.eq.s32.totalorder %s1153_s19, 1  ;;  %p799_p9 = scmp.lt.s32.totalorder %s1083_s18, 2 }
  0x46   : > { %s1251_s14 = scalar_select %p29_p13, %s1079_s17, %s31_s13  }
  0x47   : > { %p40_p3 = por %p39_p10, %p38_p6  ;;  %p1255_p7 = por %p1517_p5, %p38_p6 }
  0x48   : > { %s188_s26 = sand.u32 1, %s1079_s17   ;;  %s758_s28 = sshll.u32 %s1083_s18, 9 }
  0x49   : > { %s1518_s20 = scalar_select %p1255_p7, 1, 0 }
  0x4a   : > { %s1261_s24 = sshll.u32 %s188_s26, 5  ;;  %s1519_s0 = sld [smem:[#allocation16_spill]] }
  0x4b   : > { %s192_s5 = scalar_lea.vmem [#allocation2], %s1261_s24  ;;  %p1274_p11 = pnand %p799_p9, %p40_p3 }
  0x4c   : > { %s199_s6 = sshll.u32 %s192_s5, 4  ;;  %s1278_s7 = scalar_lea.sflag [#allocation3], %s188_s26  ;;  %s1272_s6 = int_to_ptr.vmem [resolvable:$true] %s199_s6 }
  0x4d   : > { %p947_p0 = pneg %p1274_p11 }
  0x50   : > { %s1269_s30 = scalar_lea.hbm %s1519_s0, %s758_s28  ;;  %s950_s12 = scalar_lea.hbm %s1519_s0, 1024 }
  0x51   : > { %s945_s8 = scalar_lea.hbm %s1269_s30, 512  ;;  %p951_p13 = scmp.lt.u32.totalorder %s1269_s30, %s1519_s0 }
  0x52   : > { %p946_p12 = scmp.ne.s32.totalorder %s1269_s30, %s945_s8  ;;  %p952_p6 = scmp.lt.u32.totalorder %s950_s12, %s945_s8 }
  0x53   : > { %p954_p3 = scmp.lt.u32.totalorder %s945_s8, %s1269_s30 }
  0x54   : > { %p948_p2 = pnand %p947_p0, %p946_p12  ;;  %p953_p10 = por %p952_p6, %p951_p13 }
  0x56   : > { %p949_p1 = pneg %p948_p2  ;;  %p955_p5 = por %p954_p3, %p953_p10 }
  0x58   : > { %p956_p9 = pnand %p955_p5, %p949_p1 }
  0x5a   : > { %959 = shalt.err (!%p956_p9)
}
  0x5b   : > { %s960_s26 = scalar_lea.vmem %s1272_s6, 512  ;;  %s1091_s29 = smov [#allocation2]  }
  0x5c   : > { %p961_p12 = scmp.ne.s32.totalorder %s1272_s6, %s960_s26  ;;  %s965_s5 = sshll.u32 %s1091_s29, 4  ;;  %s966_s5 = int_to_ptr.vmem [resolvable:$false] %s965_s5 }
  0x5d   : > { %s967_s9 = scalar_lea.vmem %s966_s5, 1024  ;;  %p968_p4 = scmp.lt.s32.totalorder %s1272_s6, %s966_s5 }
  0x5e   : > { %p963_p2 = pnand %p961_p12, %p947_p0  ;;  %p969_p13 = scmp.lt.s32.totalorder %s967_s9, %s960_s26 }
  0x60   : > { %p964_p7 = pneg %p963_p2  ;;  %p970_p6 = por %p969_p13, %p968_p4 }
  0x62   : > { %p971_p10 = pnand %p970_p6, %p964_p7 }
  0x64   : > { %974 = shalt.err (!%p971_p10)
}
  0x65   : > { %s1092_s8 = smov 256   ;;  %s1093_s10 = smov 16  }
  0x66   : > { %789 = dma.hbm_to_vmem [thread:$0]  (!%p1274_p11), %s1269_s30, 512, %s1272_s6, %s1278_s7, %s1092_s8, %s1092_s8, %s1093_s10  }
  0x67   : > { %s1314_s27 = scalar_lea.hbm %s1505_s1, %s758_s28  ;;  %s213_s26 = scalar_lea.vmem [#allocation5], %s1261_s24 }
  0x68   : > { %s220_s29 = sshll.u32 %s213_s26, 4  ;;  %s209_s5 = sand.u32 1, %s1083_s18   ;;  %s1317_s29 = int_to_ptr.vmem [resolvable:$true] %s220_s29 }
  0x69   : > { %s1320_s9 = scalar_lea.sflag [#allocation6], %s209_s5  ;;  %s975_s0 = scalar_lea.hbm %s1314_s27, 512 }
  0x6a   : > { %p976_p4 = scmp.ne.s32.totalorder %s1314_s27, %s975_s0  ;;  %s980_s6 = scalar_lea.hbm %s1505_s1, 1024 }
  0x6b   : > { %p981_p3 = scmp.lt.u32.totalorder %s1314_s27, %s1505_s1  ;;  %p982_p5 = scmp.lt.u32.totalorder %s980_s6, %s975_s0 }
  0x6c   : > { %p978_p7 = pnand %p976_p4, %p947_p0  ;;  %p984_p12 = scmp.lt.u32.totalorder %s975_s0, %s1314_s27 }
  0x6d   : > { %p983_p9 = por %p982_p5, %p981_p3 }
  0x6e   : > { %p979_p1 = pneg %p978_p7 }
  0x6f   : > { %p985_p2 = por %p984_p12, %p983_p9 }
  0x71   : > { %p986_p13 = pnand %p985_p2, %p979_p1 }
  0x73   : > { %989 = shalt.err (!%p986_p13)
}
  0x74   : > { %s990_s24 = scalar_lea.vmem %s1317_s29, 512  ;;  %s1094_s13 = smov [#allocation5]  }
  0x75   : > { %p991_p6 = scmp.ne.s32.totalorder %s1317_s29, %s990_s24  ;;  %s995_s26 = sshll.u32 %s1094_s13, 4  ;;  %s996_s26 = int_to_ptr.vmem [resolvable:$false] %s995_s26 }
  0x76   : > { %s997_s5 = scalar_lea.vmem %s996_s26, 1024  ;;  %p998_p7 = scmp.lt.s32.totalorder %s1317_s29, %s996_s26 }
  0x77   : > { %p993_p10 = pnand %p991_p6, %p947_p0  ;;  %p999_p3 = scmp.lt.s32.totalorder %s997_s5, %s990_s24 }
  0x79   : > { %p994_p4 = pneg %p993_p10  ;;  %p1000_p5 = por %p999_p3, %p998_p7 }
  0x7b   : > { %p1001_p9 = pnand %p1000_p5, %p994_p4 }
  0x7d   : > { %1004 = shalt.err (!%p1001_p9)
}
  0x7e   : > { %792 = dma.hbm_to_vmem [thread:$0]  (!%p1274_p11), %s1314_s27, 512, %s1317_s29, %s1320_s9, %s1092_s8, %s1092_s8, %s1093_s10  }
  0x7f   : > { %232 = sbr.rel (%p1172_p8) target bundleno = 1770 (0x6ea), region = 36  ;;  %s1352_s0 = sand.u32 (!%p1172_p8), 1, %s1075_s16  }
  0x80   : > { %s1355_s30 = sshll.u32 (!%p1172_p8), %s1352_s0, 5  ;;  %s235_s25 = scalar_lea.sflag (!%p1172_p8), [#allocation3], %s1352_s0 }
  0x81   : > { %s1359_s28 = scalar_lea.vmem (!%p1172_p8), [#allocation2], %s1355_s30  ;;  %p1521_p0 = scmp.ne.s32.totalorder (!%p1172_p8), %s1513_s21, 0 }
  0x86   : > { %1050 = dma.done.wait (%p1521_p0), %s235_s25, 512  }
  0x87   : > { %1052 = vsyncadd (%p1521_p0), %s235_s25, 4294966784  ;;  %s243_s23 = sand.u32 1, %s1153_s19   ;;  %s247_s10 = scalar_lea.vmem [#allocation5], %s1355_s30 }
  0x88   : > { %s244_s8 = scalar_lea.sflag [#allocation6], %s243_s23 }
  0x89   : > { %1054 = dma.done.wait (%p1521_p0), %s244_s8, 512  }
  0x8a   : > { %1056 = vsyncadd (%p1521_p0), %s244_s8, 4294966784  ;;  %p1522_p8 = scmp.eq.s32.totalorder %s1153_s19, 0 }
  0x8c   : > { %1058 = dma.done.wait (%p1522_p8), [#allocation6], 128   ;;  %p1523_p11 = pmov %p1522_p8 }
  0x8d   : > { %p1524_p1 = pmov %p1522_p8 }
  0x8e   : > { %1060 = vsyncadd (%p1523_p11), [#allocation6], 4294967168 }
  0x8f   : > { %1062 = dma.done.wait (%p1524_p1), [#allocation9], 256   ;;  %p1525_p12 = pmov %p1524_p1 }
  0x90   : > { %v1095_v0 = vmov 0   ;;  %v860_v1 = vld [vmem:[#allocation7] sm:$0xff]   ;;  %v1379_v2 = vld [vmem:[%s247_s10 + $0x8] sm:$0xff]  ;;  %v1381_v3 = vld [vmem:[%s247_s10 + $0x18] sm:$0xff]  ;;  %s1096_s21 = smov 112   ;;  %v1097_v9 = vmov 6  }
  0x91   : > { %1064 = vsyncadd (%p1525_p12), [#allocation9], 4294967040  ;;  %345 = vmatprep.mubr.bf16.mxu0 %v1095_v0  ;;  %467 = vmatprep.mubr.bf16.mxu1 %v1095_v0  ;;  %v1383_v4 = vld [vmem:[%s247_s10] sm:$0xff]  ;;  %v301_v5 = vpack.c.bf16 %v1381_v3, %v1379_v2  ;;  %v1387_v6 = vld [vmem:[%s247_s10 + $0x10] sm:$0xff]  ;;  %s1098_s27 = smov 96   ;;  %vm309_vm0 = vcmask 130048  }
  0x92   : > { %307 = vrot.lane.b32.xlu0 %v860_v1, %s1096_s21  ;;  %v1390_v7 = vld [vmem:[%s1359_s28 + $0x8] sm:$0xff]  ;;  %v1393_v8 = vld [vmem:[%s1359_s28 + $0x18] sm:$0xff]  ;;  %855 = vset.pattern.permute.xlu1 %v1097_v9  ;;  %v300_v10 = vpack.c.bf16 %v1387_v6, %v1383_v4  ;;  %v1401_v13 = vld [vmem:[#allocation8 + $0x8] sm:$0xff]  ;;  %v1099_v18 = vmov 7   ;;  %s1100_s29 = smov 124   ;;  %vm530_vm1 = vcmask 15360  }
  0x93   : > { %v299_v11 = vpack.c.bf16 %v1393_v8, %v1390_v7  ;;  %854 = vset.pattern.permute.xlu0 %v1097_v9  ;;  %v1399_v12 = vld [vmem:[#allocation8] sm:$0xff]  ;;  %313 = vmatprep.subr.bf16.mxu0 %v301_v5  ;;  %v1406_v14 = vld [vmem:[%s1359_s28] sm:$0xff]  ;;  %v1409_v15 = vld [vmem:[%s1359_s28 + $0x10] sm:$0xff]  ;;  %s1101_s9 = smov 2   ;;  %s1102_s6 = smov 126  }
  0x94   : > { %314 = vmatpush1.bf16.msra.mxu0 %v300_v10  ;;  %409 = vperm.xlu1 %855, %v1401_v13   ;;  %v298_v16 = vpack.c.bf16 %v1409_v15, %v1406_v14  ;;  %s284_s7 = scalar_lea.vmem [#allocation10], %s1355_s30  ;;  %s760_s24 = sshll.u32 %s1153_s19, 9 }
  0x95   : > { %359 = vmatprep.subr.bf16.mxu0 %v299_v11  ;;  %s615_s12 = sshll.u32 %s284_s7, 4  ;;  %s1458_s5 = scalar_lea.hbm %s1508_s4, %s760_s24  ;;  %s1453_s12 = int_to_ptr.vmem [resolvable:$true] %s615_s12 }
  0x96   : > { %404 = vperm.xlu0 %854, %v1399_v12   ;;  %s602_s19 = scalar_lea.sflag [#allocation4], %s1352_s0  ;;  %s1005_s30 = scalar_lea.vmem %s1453_s12, 512 }
  0x97   : > { %p1006_p2 = scmp.ne.s32.totalorder %s1453_s12, %s1005_s30  ;;  %p1526_p13 = scmp.ne.s32.totalorder %s1518_s20, 0 }
  0x98   : > { %430 = vrot.lane.b32.xlu1 %v860_v1, %s1098_s27  ;;  %s1104_s25 = smov [#allocation10]  }
  0x99   : > { %856 = vset.pattern.permute.xlu1 %v1099_v18  ;;  %p1007_p6 = pnand %p1006_p2, %p1526_p13  ;;  %s1009_s28 = sshll.u32 %s1104_s25, 4  ;;  %s1010_s28 = int_to_ptr.vmem [resolvable:$false] %s1009_s28 }
  0x9a   : > { %857 = vset.pattern.permute.xlu0 %v1099_v18  ;;  %s1011_s23 = scalar_lea.vmem %s1010_s28, 1024  ;;  %p1012_p4 = scmp.lt.s32.totalorder %s1453_s12, %s1010_s28 }
  0x9b   : > { %427 = vperm.xlu0 %857, %v1401_v13   ;;  %p1008_p10 = pneg %p1007_p6  ;;  %p1013_p7 = scmp.lt.s32.totalorder %s1011_s23, %s1005_s30 }
  0x9c   : > { %423 = vperm.xlu1 %856, %v1399_v12  }
  0x9d   : > { %p1014_p3 = por %p1013_p7, %p1012_p4 }
  0x9f   : > { %p1015_p5 = pnand %p1014_p3, %p1008_p10 }
 0x104   : > { %v308_v17 = vpop.permute.xlu0 %307 }
 0x105   : > { %748 = vmatmul.mubr.msk.bf16.vlgmr.msra.gmra.mrb[0].mxu0 %vm309_vm0, %v308_v17 }
 0x106   : > { %360 = vmatpush1.bf16.msra.mxu0 %v298_v16  ;;  %391 = vmatprep.mubr.bf16.mxu0 %v1095_v0  ;;  %v518_v0 = vadd.f32 %v1379_v2, %v1383_v4 }
 0x111   : > { %749 = vmatmul.mubr.msk.bf16.vlgmr.msra.gmra.mrb[0].mxu0 %vm309_vm0, %v860_v1 }
 0x113   : > { %v410_v21 = vpop.permute.xlu1 %409 }
 0x115   : > { %v405_v19 = vpop.permute.xlu0 %404 }
 0x117   : > { %v431_v35 = vpop.permute.xlu1 %430 }
 0x11a   : > { %v428_v38 = vpop.permute.xlu0 %427 }
 0x11b   : > { %v424_v36 = vpop.permute.xlu1 %423 }
 0x1e4   : > { %v393_v20 = vpop.f32.mrb[0].mxu0 }
 0x1e5   : > { %v412_v22 = vadd.f32 %v405_v19, %v393_v20  ;;  %v395_v23 = vpop.f32.mrb[1].mxu0 }
 0x1e6   : > { %v413_v24 = vadd.f32 %v405_v19, %v395_v23  ;;  %v397_v25 = vpop.f32.mrb[2].mxu0 }
 0x1e7   : > { %861 = vtanh.f32 %v412_v22  ;;  %v414_v26 = vadd.f32 %v410_v21, %v397_v25  ;;  %v399_v27 = vpop.f32.mrb[3].mxu0 }
 0x1e8   : > { %863 = vtanh.f32 %v413_v24  ;;  %v415_v28 = vadd.f32 %v410_v21, %v399_v27 }
 0x1e9   : > { %865 = vtanh.f32 %v414_v26 }
 0x1ea   : > { %867 = vtanh.f32 %v415_v28 }
 0x1f1   : > { %v862_v29 = vpop.eup %861 }
 0x1f2   : > { %v864_v30 = vpop.eup %863 }
 0x1f3   : > { %v866_v31 = vpop.eup %865 }
 0x1f4   : > { %v868_v32 = vpop.eup %867  ;;  %v420_v33 = vpack.c.bf16 %v866_v31, %v862_v29 }
 0x1f5   : > { %v421_v34 = vpack.c.bf16 %v868_v32, %v864_v30 }
 0x1f7   : > { %435 = vmatprep.subr.bf16.mxu1 %v421_v34 }
 0x1f8   : > { %436 = vmatpush1.bf16.msra.mxu1 %v420_v33  ;;  %v545_v33 = vlaneseq }
 0x1fb   : > { %750 = vmatmul.mubr.msk.bf16.vlgmr.msra.gmra.mrb[0].mxu1 %vm309_vm0, %v431_v35 }
 0x2ce   : > { %v469_v37 = vpop.f32.mrb[0].mxu1 }
 0x2cf   : > { %v470_v39 = vadd.f32 %v469_v37, %v424_v36  ;;  %v471_v40 = vpop.f32.mrb[1].mxu1 }
 0x2d0   : > { %v472_v41 = vadd.f32 %v471_v40, %v424_v36  ;;  %v473_v42 = vpop.f32.mrb[2].mxu1  ;;  %v546_v36 = vshrl.u32 %v545_v33, 7 }
 0x2d1   : > { %v474_v43 = vadd.f32 %v473_v42, %v428_v38  ;;  %v475_v44 = vpop.f32.mrb[3].mxu1 }
 0x2d2   : > { %v476_v45 = vadd.f32 %v475_v44, %v428_v38  ;;  %v478_v46 = vmax.f32 %v470_v39, %v472_v41  ;;  %v547_v40 = vsub.s32 0, %v546_v36 }
 0x2d4   : > { %479 = vmax.xlane.f32.xlu1 %v478_v46  ;;  %v481_v47 = vmax.f32 %v474_v43, %v476_v45 }
 0x2d6   : > { %482 = vmax.xlane.f32.xlu0 %v481_v47 }
 0x361   : > { %v480_v48 = vpop.xlane.xlu1 %479 }
 0x362   : > { %v484_v49 = vsub.f32 %v470_v39, %v480_v48  ;;  %v485_v50 = vsub.f32 %v472_v41, %v480_v48 }
 0x363   : > { %v483_v51 = vpop.xlane.xlu0 %482 }
 0x364   : > { %v488_v52 = vmul.f32 1.442695, %v484_v49  ;;  %v490_v53 = vmul.f32 1.442695, %v485_v50  ;;  %v486_v54 = vsub.f32 %v474_v43, %v483_v51  ;;  %v487_v55 = vsub.f32 %v476_v45, %v483_v51 }
 0x365   : > { %v1103_v51 = vmov 8  }
 0x366   : > { %869 = vpow2.f32 %v488_v52  ;;  %v492_v56 = vmul.f32 1.442695, %v486_v54  ;;  %v494_v57 = vmul.f32 1.442695, %v487_v55  ;;  %858 = vset.pattern.permute.xlu0 %v1103_v51  ;;  %859 = vset.pattern.permute.xlu1 %v1103_v51 }
 0x367   : > { %871 = vpow2.f32 %v490_v53 }
 0x368   : > { %873 = vpow2.f32 %v492_v56 }
 0x369   : > { %875 = vpow2.f32 %v494_v57 }
 0x370   : > { %v870_v58 = vpop.eup %869 }
 0x371   : > { %v872_v59 = vpop.eup %871 }
 0x372   : > { %v874_v60 = vpop.eup %873  ;;  %v496_v61 = vadd.f32 %v872_v59, %v870_v58 }
 0x373   : > { %v876_v62 = vpop.eup %875 }
 0x374   : > { %497 = vadd.xlane.f32.xlu1 %v496_v61  ;;  %v499_v63 = vadd.f32 %v876_v62, %v874_v60 }
 0x376   : > { %500 = vadd.xlane.f32.xlu0 %v499_v63 }
 0x378   : > { %519 = vadd.xlane.f32.xlu1 %v518_v0 }
 0x401   : > { %v498_v1 = vpop.xlane.xlu1 %497 }
 0x402   : > { %877 = vrcp.f32 %v498_v1 }
 0x403   : > { %v501_v5 = vpop.xlane.xlu0 %500 }
 0x404   : > { %879 = vrcp.f32 %v501_v5 }
 0x40c   : > { %v878_v9 = vpop.eup %877 }
 0x40d   : > { %v504_v10 = vmul.f32 %v878_v9, %v870_v58  ;;  %v505_v11 = vmul.f32 %v878_v9, %v872_v59 }
 0x40e   : > { %v880_v16 = vpop.eup %879 }
 0x40f   : > { %v1421_v17 = vmul.f32 %v504_v10, %v1406_v14  ;;  %v1424_v18 = vmul.f32 %v505_v11, %v1390_v7  ;;  %v506_v19 = vmul.f32 %v880_v16, %v874_v60  ;;  %v507_v20 = vmul.f32 %v880_v16, %v876_v62  ;;  %v520_v14 = vpop.xlane.xlu1 %519 }
 0x410   : > { %v521_v7 = vadd.f32 %v1381_v3, %v1387_v6 }
 0x411   : > { %v512_v2 = vadd.f32 %v1424_v18, %v1421_v17  ;;  %v1429_v4 = vmul.f32 %v506_v19, %v1409_v15  ;;  %v1432_v21 = vmul.f32 %v507_v20, %v1393_v8 }
 0x413   : > { %513 = vadd.xlane.f32.xlu1 %v512_v2  ;;  %v515_v22 = vadd.f32 %v1432_v21, %v1429_v4 }
 0x415   : > { %516 = vadd.xlane.f32.xlu0 %v515_v22 }
 0x419   : > { %522 = vadd.xlane.f32.xlu0 %v521_v7 }
 0x424   : > { %540 = vrot.lane.b32.xlu1 %v1399_v12, %s1100_s29 }
 0x4a0   : > { %v514_v23 = vpop.xlane.xlu1 %513 }
 0x4a1   : > { %v524_v24 = vadd.f32 %v520_v14, %v514_v23 }
 0x4a2   : > { %v517_v15 = vpop.xlane.xlu0 %516 }
 0x4a3   : > { %v526_v25 = vmul.f32 0.00390625, %v524_v24 }
 0x4a4   : > { %v541_v38 = vpop.permute.xlu1 %540 }
 0x4a5   : > { %v528_v27 = vmul.f32 %v526_v25, %v1399_v12 }
 0x4a6   : > { %v523_v26 = vpop.xlane.xlu0 %522 }
 0x4a7   : > { %v525_v8 = vadd.f32 %v523_v26, %v517_v15  ;;  %v531_v30 = vsel %vm530_vm1, %v528_v27, 0.0 }
 0x4a9   : > { %v527_v28 = vmul.f32 0.00390625, %v525_v8 }
 0x4ab   : > { %v529_v29 = vmul.f32 %v527_v28, %v1401_v13 }
 0x4ad   : > { %v532_v3 = vsel %vm530_vm1, %v529_v29, 0.0 }
 0x4ae   : > { %v533_v6 = vadd.f32 %v532_v3, %v531_v30 }
 0x4b0   : > { %v534_v31 = vrot.slane %v533_v6, 4 }
 0x4b2   : > { %v535_v32 = vadd.f32 %v534_v31, %v533_v6 }
 0x4b4   : > { %v536_v34 = vrot.slane %v535_v32, 2 }
 0x4b6   : > { %v537_v35 = vadd.f32 %v536_v34, %v535_v32 }
 0x4b8   : > { %v538_v37 = vrot.slane %v537_v35, 1 }
 0x4ba   : > { %v539_v39 = vadd.f32 %v538_v37, %v537_v35 }
 0x4bc   : > { %v543_v41 = vadd.f32 %v541_v38, %v539_v39 }
 0x4be   : > { %v544_v42 = vmax.f32 %v543_v41, 0.0 }
 0x4c0   : > { %v548_v43 = vrot.slane %v544_v42, %v547_v40 }
 0x4c2   : > { %550 = vrot.lane.b32.xlu0 %v548_v43, %s1101_s9 }
 0x534   : > { %v551_v44 = vpop.permute.xlu0 %550 }
 0x535   : > { %v553_v45 = vmul.f32 %v551_v44, %v1399_v12  ;;  %v554_v46 = vmul.f32 %v551_v44, %v1401_v13 }
 0x537   : > { %557 = vrot.lane.b32.xlu1 %v553_v45, %s1102_s6 }
 0x53b   : > { %559 = vrot.lane.b32.xlu1 %v554_v46, %s1102_s6 }
 0x5a9   : > { %v558_v47 = vpop.permute.xlu1 %557 }
 0x5aa   : > { %v563_v48 = vsel %vm530_vm1, %v558_v47, 0.0 }
 0x5ab   : > { %564 = vadd.xlane.f32.xlu0 %v563_v48 }
 0x5ad   : > { %v560_v49 = vpop.permute.xlu1 %559 }
 0x5ae   : > { %v566_v50 = vsel %vm530_vm1, %v560_v49, 0.0 }
 0x5af   : > { %567 = vadd.xlane.f32.xlu1 %v566_v50 }
 0x638   : > { %v565_v52 = vpop.xlane.xlu0 %564 }
 0x639   : > { %v569_v53 = vadd.f32 %v565_v52, %v1399_v12 }
 0x63b   : > { %v751_v54 = vmul.f32 -1.442695, %v569_v53 }
 0x63c   : > { %v568_v55 = vpop.xlane.xlu1 %567 }
 0x63d   : > { %881 = vpow2.f32 %v751_v54  ;;  %v570_v56 = vadd.f32 %v568_v55, %v1401_v13 }
 0x63f   : > { %v752_v57 = vmul.f32 -1.442695, %v570_v56 }
 0x641   : > { %883 = vpow2.f32 %v752_v57 }
 0x647   : > { %v882_v58 = vpop.eup %881 }
 0x648   : > { %v577_v59 = vadd.f32 1.0, %v882_v58 }
 0x64a   : > { %885 = vrcp.f32 %v577_v59 }
 0x64b   : > { %v884_v60 = vpop.eup %883 }
 0x64c   : > { %v578_v61 = vadd.f32 1.0, %v884_v60 }
 0x64e   : > { %887 = vrcp.f32 %v578_v61 }
 0x654   : > { %v886_v62 = vpop.eup %885 }
 0x655   : > { %585 = vperm.xlu0 %858, %v886_v62  }
 0x658   : > { %v888_v63 = vpop.eup %887 }
 0x659   : > { %590 = vperm.xlu1 %859, %v888_v63  }
 0x6d4   : > { %v586_v12 = vpop.permute.xlu0 %585 }
 0x6d5   : > { %v593_v13 = vmul.f32 %v586_v12, %v1421_v17  ;;  %v594_v0 = vmul.f32 %v586_v12, %v1424_v18 }
 0x6d7   : > { %597 = vst [vmem:[%s284_s7] sm:$0xff] %v593_v13  ;;  %598 = vst [vmem:[%s284_s7 + $0x8] sm:$0xff] %v594_v0 }
 0x6d8   : > { %v591_v1 = vpop.permute.xlu1 %590 }
 0x6d9   : > { %v595_v5 = vmul.f32 %v591_v1, %v1429_v4  ;;  %v596_v9 = vmul.f32 %v591_v1, %v1432_v21 }
 0x6db   : > { %599 = vst [vmem:[%s284_s7 + $0x10] sm:$0xff] %v595_v5  ;;  %600 = vst [vmem:[%s284_s7 + $0x18] sm:$0xff] %v596_v9 }
 0x6dc   : > { %1018 = shalt.err (!%p1015_p5)
}
 0x6dd   : > { %s1019_s8 = scalar_lea.hbm %s1458_s5, 512  ;;  %s1023_s27 = scalar_lea.hbm %s1508_s4, 1024 }
 0x6de   : > { %p1020_p9 = scmp.ne.s32.totalorder %s1458_s5, %s1019_s8  ;;  %p1024_p11 = scmp.lt.u32.totalorder %s1458_s5, %s1508_s4 }
 0x6df   : > { %p1025_p1 = scmp.lt.u32.totalorder %s1023_s27, %s1019_s8  ;;  %p1027_p2 = scmp.lt.u32.totalorder %s1019_s8, %s1458_s5 }
 0x6e0   : > { %p1021_p0 = pnand %p1020_p9, %p1526_p13 }
 0x6e1   : > { %p1026_p12 = por %p1025_p1, %p1024_p11 }
 0x6e2   : > { %p1022_p8 = pneg %p1021_p0 }
 0x6e3   : > { %p1028_p6 = por %p1027_p2, %p1026_p12 }
 0x6e5   : > { %p1029_p10 = pnand %p1028_p6, %p1022_p8 }
 0x6e7   : > { %1032 = shalt.err (!%p1029_p10)
}
 0x6e8   : > { %s1105_s6 = smov 256   ;;  %s1106_s7 = smov 16  }
 0x6e9   : > { %777 = dma.vmem_to_hbm [thread:$0]  (%p1526_p13), %s1453_s12, 512, %s1458_s5, %s602_s19, %s1105_s6, %s1105_s6, %s1106_s7  }
 0x6ea PF: > { %s630_s24 = sand.u32 1, %s1071_s15   ;;  %p1527_p4 = scmp.ne.s32.totalorder %s1514_s22, 0 }
 0x6eb   : > { %p1528_p7 = scmp.ge.s32.totalorder %s1083_s18, 2  ;;  %s631_s13 = scalar_lea.sflag [#allocation4], %s630_s24 }
 0x6ed   : > { %p794_p3 = pnand %p1528_p7, %p1527_p4 }
 0x6ef   : > { %1066 = dma.done.wait (!%p794_p3), %s631_s13, 512  }
 0x6f0   : > { %1068 = vsyncadd (!%p794_p3), %s631_s13, 4294966784  ;;  %p21_p5 = scmp.ge.s32.totalorder %s1242_s11, 4   ;;  %s1529_s15 = smov %s1075_s16 }
 0x6f1   : > { %s1530_s16 = smov %s1079_s17  ;;  %s1531_s17 = smov %s1251_s14 }
 0x6f2   : > { %s1532_s18 = smov %s1242_s11  ;;  %23 = sbr.rel (!%p21_p5) target bundleno = 10 (0xa), region = 102 }
 0x6f9   :  { %636 = vsyncpa [#allocation3], 1 }
 0x6fa   :  { %638 = vsyncpa [#allocation3 + $0x1], 1 }
 0x6fb   :  { %639 = vsyncpa [#allocation6], 1 }
 0x6fc   :  { %641 = vsyncpa [#allocation6 + $0x1], 1 }
 0x6fd   :  { %642 = vsyncpa [#allocation9], 1 }
 0x6fe   :  { %643 = vsyncpa [#allocation4], 1 }
 0x6ff   :  { %645 = vsyncpa [#allocation4 + $0x1], 1 }

</bundles_post_ra>
